<compile_context>
chip_gen: v6e
topology: v6e:2x2x1
jax: 0.10.0
libtpu: 0.0.40
codegen_flags: <defaults>
</compile_context>

<pallas_src>
import functools

import jax
import jax.numpy as jnp
from jax.experimental import pallas as pl
from jax.experimental.pallas import tpu as pltpu


def _round_up(x: int, m: int) -> int:
    return (x + m - 1) // m * m


def _mlp_kernel(x_ref, w1_ref, b1_ref, w2_ref, b2_ref, o_ref):
    # fc1: [TM, D] @ [D, Hp] -> f32 accumulation on the MXU.
    x = x_ref[...].astype(w1_ref.dtype)
    h = jnp.dot(x, w1_ref[...], preferred_element_type=jnp.float32)
    h = h + b1_ref[...].astype(jnp.float32)
    # dropout (eval) -> identity; sigmoid on the EUP path, f32 math.
    h = jax.nn.sigmoid(h)
    # fc2: [TM, Hp] @ [Hp, C] -> f32 accumulation; C stays narrow (no output
    # padding), the store below is a masked narrow vst.
    out = jnp.dot(h.astype(w2_ref.dtype), w2_ref[...],
                  preferred_element_type=jnp.float32)
    out = out + b2_ref[...].astype(jnp.float32)
    o_ref[...] = out.astype(o_ref.dtype)


def prepare_params(w1, b1, w2, b2):
    """One-time weight prep (call at init, NOT per forward).

    Pads the hidden dim to a multiple of 128 so the fc1 output / sigmoid /
    fc2 contraction are lane-dense.  Padding is mathematically exact:
    padded hidden units give sigmoid(0)=0.5 but multiply all-zero W2 rows.
    The class dim is left unpadded (narrow masked output store).
    """
    input_dim, num_hidden = w1.shape
    num_classes = w2.shape[1]
    hp = _round_up(num_hidden, 128)
    w1p = jnp.pad(w1, ((0, 0), (0, hp - num_hidden)))
    b1p = jnp.pad(b1, (0, hp - num_hidden)).reshape(1, hp)
    w2p = jnp.pad(w2, ((0, hp - num_hidden), (0, 0)))
    b2p = b2.reshape(1, num_classes)
    return w1p, b1p, w2p, b2p


@functools.partial(jax.jit, static_argnames=("block_m",))
def nonlinear_forward(x, w1p, b1p, w2p, b2p, *, block_m: int = 1024):
    """Fused MLP forward, gridded over the batch dimension.

    Takes pre-padded params from `prepare_params`.  Weights/biases stay
    VMEM-resident across grid steps (index map returns block (0,0) always);
    x/out tiles are auto double-buffered HBM<->VMEM.
    """
    batch, input_dim = x.shape
    hp = w1p.shape[1]
    num_classes = w2p.shape[1]

    # --- batch tiling ------------------------------------------------------
    tm = min(block_m, _round_up(batch, 8))
    if tm >= batch and batch >= 16:
        # Keep >= 2 grid steps so the "parallel" axis can shard across the
        # two TensorCores on v7x instead of collapsing to a 1-step grid.
        tm = _round_up(pl.cdiv(batch, 2), 8)
    grid = (pl.cdiv(batch, tm),)   # ragged last tile handled by boundary masking

    # --- VMEM budget (important on v7x: 64 MiB physical) --------------------
    x_it = x.dtype.itemsize
    w_bytes = (w1p.size * w1p.dtype.itemsize + b1p.size * b1p.dtype.itemsize
               + w2p.size * w2p.dtype.itemsize + b2p.size * b2p.dtype.itemsize)
    vmem_need = (2 * (tm * input_dim * x_it + tm * num_classes * x_it)  # x/out tiles, dbl-buffered
                 + 2 * w_bytes                                          # resident weights
                 + 4 * tm * hp * 4)                                     # f32 intermediates headroom
    vmem_limit = min(64 * 1024 * 1024, max(32 * 1024 * 1024, 2 * vmem_need))
    # NOTE: weight/bias blocks are grid-invariant; pipeline_mode=pl.Buffered(1)
    # would halve their VMEM footprint for free on v7x with large input_dim.

    cost = pl.CostEstimate(
        flops=2 * batch * (input_dim * hp + hp * num_classes),
        transcendentals=batch * hp,
        bytes_accessed=int(batch * input_dim * x_it          # x read
                           + w_bytes                          # weights (once)
                           + batch * num_classes * x_it),     # out write (unpadded!)
    )

    return pl.pallas_call(
        _mlp_kernel,
        out_shape=jax.ShapeDtypeStruct((batch, num_classes), x.dtype),
        grid_spec=pltpu.PrefetchScalarGridSpec(
            num_scalar_prefetch=0,
            grid=grid,
            in_specs=[
                pl.BlockSpec((tm, input_dim),       lambda i: (i, 0)),  # x tile
                pl.BlockSpec((input_dim, hp),       lambda i: (0, 0)),  # W1 (resident)
                pl.BlockSpec((1, hp),               lambda i: (0, 0)),  # b1 (resident)
                pl.BlockSpec((hp, num_classes),     lambda i: (0, 0)),  # W2 (resident)
                pl.BlockSpec((1, num_classes),      lambda i: (0, 0)),  # b2 (resident)
            ],
            out_specs=pl.BlockSpec((tm, num_classes), lambda i: (i, 0)),
        ),
        compiler_params=pltpu.CompilerParams(
            dimension_semantics=("parallel",),
            vmem_limit_bytes=int(vmem_limit)),
        cost_estimate=cost,
    )(x, w1p, b1p, w2p, b2p)


def init_params(key, input_dim, num_hidden, num_classes, dtype=jnp.float32):
    """Deterministic init mimicking torch.nn.Linear's default
    U(-1/sqrt(fan_in), 1/sqrt(fan_in))."""
    k1, k2, k3, k4 = jax.random.split(key, 4)
    bound1 = 1.0 / (input_dim ** 0.5)
    bound2 = 1.0 / (num_hidden ** 0.5)
    w1 = jax.random.uniform(k1, (input_dim, num_hidden), dtype, -bound1, bound1)
    b1 = jax.random.uniform(k2, (num_hidden,), dtype, -bound1, bound1)
    w2 = jax.random.uniform(k3, (num_hidden, num_classes), dtype, -bound2, bound2)
    b2 = jax.random.uniform(k4, (num_classes,), dtype, -bound2, bound2)
    return w1, b1, w2, b2


if __name__ == "__main__":
    # Probe-sized shapes: batch=8, input_dim=32, num_hidden=16, num_classes=8.
    batch, input_dim, num_hidden, num_classes = 8, 32, 16, 8
    dropout_rate = 0.1  # unused at inference (identity)

    key = jax.random.PRNGKey(0)
    kx, kp = jax.random.split(key)
    x = jax.random.normal(kx, (batch, input_dim), dtype=jnp.float32)
    w1, b1, w2, b2 = init_params(kp, input_dim, num_hidden, num_classes)
    params = prepare_params(w1, b1, w2, b2)   # one-time padding, out of the hot path

    def ref_fwd(xx, dt=jnp.float32):
        return (jax.nn.sigmoid(xx @ w1 + b1) @ w2 + b2).astype(dt)

    # Tolerances account for TPU default matmul precision (bf16 MXU passes)
    # possibly differing between the Pallas kernel and the XLA reference.
    TOL_F32 = dict(atol=2e-2, rtol=1e-2)

    # 1) Small batch, single-tile grid.
    out = jax.block_until_ready(nonlinear_forward(x, *params))
    assert out.shape == (batch, num_classes)
    assert jnp.allclose(out, ref_fwd(x), **TOL_F32)

    # 2) Large batch exercising the multi-tile "parallel" grid (tm=1024, 2 steps).
    big_batch = 2048
    xb = jax.random.normal(jax.random.PRNGKey(1), (big_batch, input_dim), jnp.float32)
    out_big = jax.block_until_ready(nonlinear_forward(xb, *params))
    assert out_big.shape == (big_batch, num_classes)
    assert jnp.allclose(out_big, ref_fwd(xb), **TOL_F32)

    # 3) Ragged batch: cdiv grid + boundary-masked last tile (no x pad copy).
    rag_batch = 100
    xr = jax.random.normal(jax.random.PRNGKey(2), (rag_batch, input_dim), jnp.float32)
    out_rag = jax.block_until_ready(nonlinear_forward(xr, *params))
    assert out_rag.shape == (rag_batch, num_classes)
    assert jnp.allclose(out_rag, ref_fwd(xr), **TOL_F32)

    # 4) bf16 streaming path (v6e/v7x): x, weights and output in bf16,
    #    f32 accumulation + f32 sigmoid in-kernel.
    params_bf16 = prepare_params(w1.astype(jnp.bfloat16), b1.astype(jnp.bfloat16),
                                 w2.astype(jnp.bfloat16), b2.astype(jnp.bfloat16))
    x_bf16 = x.astype(jnp.bfloat16)
    out_bf16 = jax.block_until_ready(nonlinear_forward(x_bf16, *params_bf16))
    assert out_bf16.shape == (batch, num_classes)
    assert out_bf16.dtype == jnp.bfloat16
    assert jnp.allclose(out_bf16.astype(jnp.float32), ref_fwd(x), atol=7e-2, rtol=0.0)

    print("KERNEL_OK")
</pallas_src>

<mosaic_0001>
module attributes {stable_mosaic.version = 11 : i64} {
  func.func @_mlp_kernel(%arg0: i32, %arg1: memref<8x32xf32, #tpu.memory_space<vmem>>, %arg2: memref<32x128xf32, #tpu.memory_space<vmem>>, %arg3: memref<1x128xf32, #tpu.memory_space<vmem>>, %arg4: memref<128x8xf32, #tpu.memory_space<vmem>>, %arg5: memref<1x8xf32, #tpu.memory_space<vmem>>, %arg6: memref<8x8xf32, #tpu.memory_space<vmem>>) attributes {dimension_semantics = [#tpu.dimension_semantics<parallel>], iteration_bounds = array<i64: 1>, scalar_prefetch = 0 : i64, scratch_operands = 0 : i64, tpu.core_type = #tpu.core_type<tc>, window_params = [{transform_indices = @transform_0, window_bounds = array<i64: 8, 32>}, {pipeline_mode = #tpu.pipeline_mode<synchronous>, transform_indices = @transform_1, window_bounds = array<i64: 32, 128>}, {pipeline_mode = #tpu.pipeline_mode<synchronous>, transform_indices = @transform_2, window_bounds = array<i64: 1, 128>}, {pipeline_mode = #tpu.pipeline_mode<synchronous>, transform_indices = @transform_3, window_bounds = array<i64: 128, 8>}, {pipeline_mode = #tpu.pipeline_mode<synchronous>, transform_indices = @transform_4, window_bounds = array<i64: 1, 8>}, {transform_indices = @transform_5, window_bounds = array<i64: 8, 8>}]} {
    %c0 = arith.constant 0 : index
    %c0_0 = arith.constant 0 : index
    %0 = vector.load %arg1[%c0, %c0_0] : memref<8x32xf32, #tpu.memory_space<vmem>>, vector<8x32xf32>
    %c0_1 = arith.constant 0 : index
    %c0_2 = arith.constant 0 : index
    %1 = vector.load %arg2[%c0_1, %c0_2] : memref<32x128xf32, #tpu.memory_space<vmem>>, vector<32x128xf32>
    %cst = arith.constant dense<0.000000e+00> : vector<8x128xf32>
    %2 = tpu.matmul %0, %1, %cst {dimension_numbers = #tpu.dot_dimension_numbers<[1], [0], [0], [1], [0, 0, 1, 1], [], []>} : vector<8x32xf32>, vector<32x128xf32>, vector<8x128xf32> -> vector<8x128xf32>
    %c0_3 = arith.constant 0 : index
    %c0_4 = arith.constant 0 : index
    %3 = vector.load %arg3[%c0_3, %c0_4] : memref<1x128xf32, #tpu.memory_space<vmem>>, vector<1x128xf32>
    %4 = vector.broadcast %3 : vector<1x128xf32> to vector<8x128xf32>
    %5 = arith.addf %2, %4 : vector<8x128xf32>
    %6 = arith.negf %5 : vector<8x128xf32>
    %7 = math.exp %6 : vector<8x128xf32>
    %cst_5 = arith.constant 1.000000e+00 : f32
    %8 = vector.broadcast %cst_5 : f32 to vector<8x128xf32>
    %9 = arith.addf %8, %7 : vector<8x128xf32>
    %10 = arith.divf %8, %9 : vector<8x128xf32>
    %c0_6 = arith.constant 0 : index
    %c0_7 = arith.constant 0 : index
    %11 = vector.load %arg4[%c0_6, %c0_7] : memref<128x8xf32, #tpu.memory_space<vmem>>, vector<128x8xf32>
    %cst_8 = arith.constant dense<0.000000e+00> : vector<8x8xf32>
    %12 = tpu.matmul %10, %11, %cst_8 {dimension_numbers = #tpu.dot_dimension_numbers<[1], [0], [0], [1], [0, 0, 1, 1], [], []>} : vector<8x128xf32>, vector<128x8xf32>, vector<8x8xf32> -> vector<8x8xf32>
    %c0_9 = arith.constant 0 : index
    %c0_10 = arith.constant 0 : index
    %13 = vector.load %arg5[%c0_9, %c0_10] : memref<1x8xf32, #tpu.memory_space<vmem>>, vector<1x8xf32>
    %14 = vector.broadcast %13 : vector<1x8xf32> to vector<8x8xf32>
    %15 = arith.addf %12, %14 : vector<8x8xf32>
    %c0_11 = arith.constant 0 : index
    %c0_12 = arith.constant 0 : index
    %16 = vector.load %arg6[%c0_11, %c0_12] : memref<8x8xf32, #tpu.memory_space<vmem>>, vector<8x8xf32>
    tpu.vector_store %arg6[%c0_11, %c0_12], %15 {strides = array<i32>} : memref<8x8xf32, #tpu.memory_space<vmem>>, vector<8x8xf32>,
    return
  }
  func.func @transform_0(%arg0: i32) -> (i32, i32) {
    %c0_i32 = arith.constant 0 : i32
    %c0_i32_0 = arith.constant 0 : i32
    return %arg0, %c0_i32 : i32, i32
  }
  func.func @transform_1(%arg0: i32) -> (i32, i32) {
    %c0_i32 = arith.constant 0 : i32
    %c0_i32_0 = arith.constant 0 : i32
    %c0_i32_1 = arith.constant 0 : i32
    return %c0_i32, %c0_i32_0 : i32, i32
  }
  func.func @transform_2(%arg0: i32) -> (i32, i32) {
    %c0_i32 = arith.constant 0 : i32
    %c0_i32_0 = arith.constant 0 : i32
    %c0_i32_1 = arith.constant 0 : i32
    return %c0_i32, %c0_i32_0 : i32, i32
  }
  func.func @transform_3(%arg0: i32) -> (i32, i32) {
    %c0_i32 = arith.constant 0 : i32
    %c0_i32_0 = arith.constant 0 : i32
    %c0_i32_1 = arith.constant 0 : i32
    return %c0_i32, %c0_i32_0 : i32, i32
  }
  func.func @transform_4(%arg0: i32) -> (i32, i32) {
    %c0_i32 = arith.constant 0 : i32
    %c0_i32_0 = arith.constant 0 : i32
    %c0_i32_1 = arith.constant 0 : i32
    return %c0_i32, %c0_i32_0 : i32, i32
  }
  func.func @transform_5(%arg0: i32) -> (i32, i32) {
    %c0_i32 = arith.constant 0 : i32
    %c0_i32_0 = arith.constant 0 : i32
    return %arg0, %c0_i32 : i32, i32
  }
}

</mosaic_0001>

<bundles_post_ra>
// kernel: nonlinear_forward.1
= control target key start
LH: loop header
LB: loop body
LE: loop exit
PB: predicated region body
PF: predicated region fallthrough
CT: control target
= control target key end

     0   :  { %v323_v1 = vmov 0.0   ;;  %vm324_vm0 = vmmov 0   ;;  %s450_s0 = inlined_call_operand.vmem [shape: f32[8,32], index: 0, kind: input, shape index: {}]   ;;  %s451_s1 = inlined_call_operand.vmem [shape: f32[32,128], index: 1, kind: input, shape index: {}]   ;;  %s452_s2 = inlined_call_operand.vmem [shape: f32[1,128], index: 2, kind: input, shape index: {}]   ;;  %s453_s3 = inlined_call_operand.vmem [shape: f32[128,8], index: 3, kind: input, shape index: {}]   ;;  %s454_s4 = inlined_call_operand.vmem [shape: f32[1,8], index: 4, kind: input, shape index: {}]   ;;  %s455_s5 = inlined_call_operand.hbm [shape: f32[8,8], index: 5, kind: output, shape index: {}]  }
   0x1   :  { %v25_v0 = vld [vmem:[%s451_s1 + $0x18] sm:$0xff]  ;;  %248 = vmatprep.subr.mxu0 %v323_v1  ;;  %v24_v2 = vld [vmem:[%s451_s1 + $0x10] sm:$0xff]  ;;  %256 = vmatprep.mubr.msk.f32.mxu0 %vm324_vm0, %v323_v1 }
   0x2   :  { %249 = vmatpush3.msra.mxu0 %v25_v0  ;;  %259 = vmatprep.subr.mxu1 %v323_v1 }
   0x3   :  { %10 = vsyncpa [#allocation3], 0  ;;  %250 = vmatprep.subr.mxu0 %v323_v1  ;;  %v23_v3 = vld [vmem:[%s451_s1 + $0x8] sm:$0xff]  ;;  %291 = vmatprep.mubr.msk.f32.mxu1 %vm324_vm0, %v323_v1  ;;  %v22_v4 = vld [vmem:[%s451_s1] sm:$0xff]  ;;  %vm33_vm1 = vcmask 261120   ;;  %s325_s9 = smov [#allocation2]  }
   0x4   :  { %251 = vmatpush3.msra.mxu0 %v24_v2  ;;  %v21_v5 = vld [vmem:[%s450_s0] sm:$0xff]  ;;  %v128_v6 = vld [vmem:[%s453_s3 + $0x78] sm:$0xff]  ;;  %v127_v7 = vld [vmem:[%s453_s3 + $0x70] sm:$0xff]  ;;  %s214_s10 = sshll.u32 %s325_s9, 4  ;;  %vm206_vm2 = vcmask 64512   ;;  %s215_s10 = int_to_ptr.vmem [resolvable:$true] %s214_s10 }
   0x5   :  { %252 = vmatprep.subr.mxu0 %v323_v1  ;;  %260 = vmatpush3.msra.mxu1 %v128_v6  ;;  %v126_v8 = vld [vmem:[%s453_s3 + $0x68] sm:$0xff]  ;;  %v125_v9 = vld [vmem:[%s453_s3 + $0x60] sm:$0xff]  ;;  %v124_v10 = vld [vmem:[%s453_s3 + $0x58] sm:$0xff]  ;;  %p306_p1 = scmp.lt.s32.totalorder %s215_s10, %s215_s10 }
   0x6   :  { %253 = vmatpush3.msra.mxu0 %v23_v3  ;;  %261 = vmatprep.subr.mxu1 %v323_v1  ;;  %v123_v11 = vld [vmem:[%s453_s3 + $0x50] sm:$0xff]  ;;  %v122_v12 = vld [vmem:[%s453_s3 + $0x48] sm:$0xff]  ;;  %v121_v13 = vld [vmem:[%s453_s3 + $0x40] sm:$0xff] }
   0x7   :  { %254 = vmatprep.subr.mxu0 %v323_v1  ;;  %262 = vmatpush3.msra.mxu1 %v127_v7  ;;  %v120_v14 = vld [vmem:[%s453_s3 + $0x38] sm:$0xff]  ;;  %v119_v15 = vld [vmem:[%s453_s3 + $0x30] sm:$0xff]  ;;  %v118_v16 = vld [vmem:[%s453_s3 + $0x28] sm:$0xff] }
   0x8   :  { %255 = vmatpush3.msra.mxu0 %v22_v4  ;;  %263 = vmatprep.subr.mxu1 %v323_v1  ;;  %v117_v17 = vld [vmem:[%s453_s3 + $0x20] sm:$0xff]  ;;  %v116_v18 = vld [vmem:[%s453_s3 + $0x18] sm:$0xff]  ;;  %v115_v19 = vld [vmem:[%s453_s3 + $0x10] sm:$0xff] }
   0x9   :  { %257 = vmatmul.mubr.msk.f32.vlgmr.msra.gmra.mxu0 %vm33_vm1, %v21_v5  ;;  %264 = vmatpush3.msra.mxu1 %v126_v8  ;;  %v114_v20 = vld [vmem:[%s453_s3 + $0x8] sm:$0xff]  ;;  %v113_v21 = vld [vmem:[%s453_s3] sm:$0xff] }
   0xa   :  { %265 = vmatprep.subr.mxu1 %v323_v1  ;;  %v222_v22 = vld [vmem:[%s452_s2] ss:$0 sm:$0xff]  ;;  %s301_s2 = scalar_lea.vmem %s215_s10, 128 }
   0xb   :  { %266 = vmatpush3.msra.mxu1 %v125_v9  ;;  %v225_v30 = vld [vmem:[%s454_s4] ss:$0 sm:$0xff]  ;;  %p302_p0 = scmp.ne.s32.totalorder %s215_s10, %s301_s2  ;;  %p307_p2 = scmp.lt.s32.totalorder %s301_s2, %s301_s2 }
   0xc   :  { %267 = vmatprep.subr.mxu1 %v323_v1 }
   0xd   :  { %268 = vmatpush3.msra.mxu1 %v124_v10  ;;  %p308_p3 = por %p307_p2, %p306_p1 }
   0xe   :  { %269 = vmatprep.subr.mxu1 %v323_v1 }
   0xf   :  { %270 = vmatpush3.msra.mxu1 %v123_v11  ;;  %p309_p4 = pnand %p308_p3, %p302_p0 }
  0x10   :  { %271 = vmatprep.subr.mxu1 %v323_v1 }
  0x11   :  { %272 = vmatpush3.msra.mxu1 %v122_v12 }
  0x12   :  { %273 = vmatprep.subr.mxu1 %v323_v1 }
  0x13   :  { %274 = vmatpush3.msra.mxu1 %v121_v13 }
  0x14   :  { %275 = vmatprep.subr.mxu1 %v323_v1 }
  0x15   :  { %276 = vmatpush3.msra.mxu1 %v120_v14 }
  0x16   :  { %277 = vmatprep.subr.mxu1 %v323_v1 }
  0x17   :  { %278 = vmatpush3.msra.mxu1 %v119_v15 }
  0x18   :  { %279 = vmatprep.subr.mxu1 %v323_v1 }
  0x19   :  { %280 = vmatpush3.msra.mxu1 %v118_v16 }
  0x1a   :  { %281 = vmatprep.subr.mxu1 %v323_v1 }
  0x1b   :  { %282 = vmatpush3.msra.mxu1 %v117_v17 }
  0x1c   :  { %283 = vmatprep.subr.mxu1 %v323_v1 }
  0x1d   :  { %284 = vmatpush3.msra.mxu1 %v116_v18 }
  0x1e   :  { %285 = vmatprep.subr.mxu1 %v323_v1 }
  0x1f   :  { %286 = vmatpush3.msra.mxu1 %v115_v19 }
  0x20   :  { %287 = vmatprep.subr.mxu1 %v323_v1 }
  0x21   :  { %288 = vmatpush3.msra.mxu1 %v114_v20 }
  0x22   :  { %289 = vmatprep.subr.mxu1 %v323_v1 }
  0x23   :  { %290 = vmatpush3.msra.mxu1 %v113_v21 }
  0xc9   :  { %v103_v23 = vpop.f32.mrf.mxu0 }
  0xca   :  { %v104_v24 = vadd.f32 %v222_v22, %v103_v23 }
  0xcb   :  { %v258_v25 = vpop.f32.mrf.mxu0 }
  0xcc   :  { %v224_v26 = vmul.f32 -1.442695, %v104_v24 }
  0xce   :  { %297 = vpow2.f32 %v224_v26 }
  0xdb   :  { %v298_v27 = vpop.eup %297 }
  0xdc   :  { %v110_v28 = vadd.f32 1.0, %v298_v27 }
  0xde   :  { %299 = vrcp.f32 %v110_v28 }
  0xeb   :  { %v300_v29 = vpop.eup %299 }
  0xec   :  { %292 = vmatmul.mubr.f32.vlgmr.msra.gmra.mxu1 %v300_v29 }
 0x1ac   :  { %v202_v31 = vpop.f32.mrf.mxu1 }
 0x1ad   :  { %v203_v32 = vadd.f32 %v225_v30, %v202_v31 }
 0x1ae   :  { %v293_v33 = vpop.f32.mrf.mxu1 }
 0x1af   :  { %207 = vst.msk [vmem:[#allocation2] sm:$0xff] %vm206_vm2, %v203_v32 }
 0x1b0   :  { %312 = shalt.err (!%p309_p4)
}
 0x1b1   :  { %217 = dma.vmem_to_hbm [thread:$0]  %s215_s10, 128, %s455_s5, [#allocation3]  }
 0x1b2   :  { %321 = dma.done.wait [#allocation3], 128  }
 0x1b3   :  { %322 = vsyncadd [#allocation3], 4294967168 }
 0x1b4   :  { %221 = vsyncpa [#allocation3], 1 }

</bundles_post_ra>
